<compile_context>
chip_gen: v6e
topology: v6e:2x2x1
jax: 0.10.0
libtpu: 0.0.40
codegen_flags: <defaults>
</compile_context>

<pallas_src>
import jax
import jax.numpy as jnp
from jax.experimental import pallas as pl
from jax.experimental.pallas import tpu as pltpu


_LANE = 128  # lane width: blocked (non-full-dim) last dims are multiples of this


def _cdiv(a, b):
    return (a + b - 1) // b


def _round_up(x, m):
    return ((x + m - 1) // m) * m


def _num_steps(tc, tm, target=1024):
    """Pick the grid length along the time axis.

    >= 2 steps when both regions have at least two 128-wide blocks (so v7x's
    two TensorCores can split the 'parallel' axis), otherwise 1 step (fewest
    launches on single-TC parts).  Block widths are kept near `target` for
    long sequences.  Never lets a grid step fall entirely outside either
    output (so no fully out-of-bounds block is ever referenced).
    """
    if tc >= 2 * _LANE and tm >= 2 * _LANE:
        n = max(2, _cdiv(max(tc, tm), target))
    else:
        n = 1
    while n > 1:
        tbs = _round_up(_cdiv(tc, n), _LANE)
        tbm = _round_up(_cdiv(tm, n), _LANE)
        if (n - 1) * tbs < tc and (n - 1) * tbm < tm:
            break
        n -= 1
    return n


def _masks_kernel(lens_ref, src_ref, mel_ref):
    """Writes one time-block of each mask.

    lens_ref: (B, 2) int32, column 0 = contents_lens, column 1 = mel_lens.
    src_ref:  (B, tbs) bool block of the contents mask (True == padding).
    mel_ref:  (B, tbm) bool block of the mel mask      (True == padding).
    """
    _, tbs = src_ref.shape
    _, tbm = mel_ref.shape
    t = pl.program_id(0)

    lens = lens_ref[...]                      # (B, 2) int32, resident across steps
    src_thr = lens[:, 0:1]                    # (B, 1)
    mel_thr = lens[:, 1:2]                    # (B, 1)

    # Single-row iotas; the >= compare broadcasts over the batch rows.
    ids_s = t * tbs + jax.lax.broadcasted_iota(jnp.int32, (1, tbs), 1)
    ids_m = t * tbm + jax.lax.broadcasted_iota(jnp.int32, (1, tbm), 1)

    src_ref[...] = ids_s >= src_thr           # (B, tbs) bool
    mel_ref[...] = ids_m >= mel_thr           # (B, tbm) bool


def get_masks(contents_lens, contents_max_len, mel_lens, mel_max_len):
    """Returns (src_masks, mel_masks) as bool [B, T], True == padding."""
    tc = int(contents_max_len)
    tm = int(mel_max_len)
    b = contents_lens.shape[0]

    # Degenerate shapes (empty batch / zero-length axis): no kernel needed.
    if b == 0 or tc == 0 or tm == 0:
        src = (jnp.arange(tc, dtype=jnp.int32)[None, :]
               >= contents_lens.astype(jnp.int32)[:, None])
        mel = (jnp.arange(tm, dtype=jnp.int32)[None, :]
               >= mel_lens.astype(jnp.int32)[:, None])
        return src, mel

    n = _num_steps(tc, tm)
    if n == 1:
        # Full-dim blocks are exempt from the (8, 128) divisibility rule.
        tbs, tbm = tc, tm
    else:
        tbs = _round_up(_cdiv(tc, n), _LANE)
        tbm = _round_up(_cdiv(tm, n), _LANE)

    lens = jnp.stack([contents_lens.astype(jnp.int32),
                      mel_lens.astype(jnp.int32)], axis=-1)       # (B, 2)

    cost = pl.CostEstimate(flops=b * (tc + tm),
                           transcendentals=0,
                           bytes_accessed=b * (tc + tm) + b * 2 * 4)

    src_masks, mel_masks = pl.pallas_call(
        _masks_kernel,
        out_shape=(jax.ShapeDtypeStruct((b, tc), jnp.bool_),
                   jax.ShapeDtypeStruct((b, tm), jnp.bool_)),
        grid=(n,),
        in_specs=[pl.BlockSpec((b, 2), lambda t: (0, 0))],
        out_specs=(pl.BlockSpec((b, tbs), lambda t: (0, t)),
                   pl.BlockSpec((b, tbm), lambda t: (0, t))),
        compiler_params=pltpu.CompilerParams(
            dimension_semantics=("parallel",)),
        cost_estimate=cost,
    )(lens)
    return src_masks, mel_masks


class GradTTS:
    """JAX/Pallas port of fish_diffusion.archs.diffsinger.grad_tts.GradTTS (forward path).

    Mask / feature-routing logic of forward()/forward_features() is reproduced
    exactly (training-mode mask semantics: provided mel_lens / mel_max_len are
    used directly, keeping shapes static).
    """

    def __init__(self):
        # TODO(synk): DIFFUSIONS.build(model_config.diffusion).train_step is an
        # external registry-built denoiser with no definition in the reference
        # module; the returned loss is therefore the eval-mode value 0.0.
        # TODO(synk): the eval-mode random mel_lens perturbation produces a
        # data-dependent mel_max_len (dynamic output shape) with no static-shape
        # JAX equivalent; the provided mel_max_len is used instead.
        pass

    def forward_features(self, speakers, contents, contents_lens, contents_max_len,
                         mel=None, mel_lens=None, mel_max_len=None, pitches=None,
                         pitch_shift=None, phones2mel=None, energy=None):
        src_masks, mel_masks = get_masks(contents_lens, contents_max_len,
                                         mel_lens, mel_max_len)
        return dict(features=contents, cond_masks=src_masks,
                    x_masks=mel_masks, x_lens=mel_lens)

    def forward(self, speakers, contents, contents_lens, contents_max_len,
                mel=None, mel_lens=None, mel_max_len=None, pitches=None,
                pitch_shift=None, phones2mel=None, energy=None):
        features = self.forward_features(
            speakers=speakers, contents=contents, contents_lens=contents_lens,
            contents_max_len=contents_max_len, mel=mel, mel_lens=mel_lens,
            mel_max_len=mel_max_len, pitches=pitches, pitch_shift=pitch_shift,
            phones2mel=phones2mel, energy=energy)

        output_dict = {"loss": 0.0}
        output_dict["features"] = features["features"]
        output_dict["x_masks"] = features["x_masks"]
        output_dict["x_lens"] = features["x_lens"]
        output_dict["cond_masks"] = features["cond_masks"]
        return output_dict

    __call__ = forward


if __name__ == "__main__":
    key = jax.random.PRNGKey(0)
    k_contents, k_mel, k_spk = jax.random.split(key, 3)

    B = 2
    T_CONTENT, C = 8, 32      # contents: [B, T_content, C]
    T_MEL, N_MELS = 16, 32    # mel:      [B, T_mel, n_mels]

    speakers = jnp.arange(B, dtype=jnp.int32)
    contents = jax.random.normal(k_contents, (B, T_CONTENT, C), dtype=jnp.float32)
    contents_lens = jnp.array([T_CONTENT, 5], dtype=jnp.int32)
    contents_max_len = T_CONTENT
    mel = jax.random.normal(k_mel, (B, T_MEL, N_MELS), dtype=jnp.float32)
    mel_lens = jnp.array([T_MEL, 11], dtype=jnp.int32)
    mel_max_len = T_MEL

    model = GradTTS()
    out = model(speakers, contents, contents_lens, contents_max_len,
                mel=mel, mel_lens=mel_lens, mel_max_len=mel_max_len)

    jax.block_until_ready(out["x_masks"])
    jax.block_until_ready(out["cond_masks"])
    jax.block_until_ready(out["features"])

    # Reference check (plain JAX) against the Pallas kernel result.
    ids_c = jnp.arange(contents_max_len)[None, :]
    ids_m = jnp.arange(mel_max_len)[None, :]
    ref_src = ids_c >= contents_lens[:, None]
    ref_mel = ids_m >= mel_lens[:, None]
    assert out["cond_masks"].shape == (B, contents_max_len)
    assert out["x_masks"].shape == (B, mel_max_len)
    assert out["cond_masks"].dtype == jnp.bool_ and out["x_masks"].dtype == jnp.bool_
    assert bool(jnp.array_equal(out["cond_masks"], ref_src))
    assert bool(jnp.array_equal(out["x_masks"], ref_mel))
    assert bool(jnp.array_equal(out["features"], contents))
    assert out["loss"] == 0.0

    # Second check: non-lane-aligned lengths, single-step (full-dim block) path.
    B2, TC2, TM2 = 3, 200, 300
    c_lens2 = jnp.array([200, 37, 129], dtype=jnp.int32)
    m_lens2 = jnp.array([300, 11, 257], dtype=jnp.int32)
    src2, mel2 = get_masks(c_lens2, TC2, m_lens2, TM2)
    jax.block_until_ready(src2)
    jax.block_until_ready(mel2)
    ref_src2 = jnp.arange(TC2)[None, :] >= c_lens2[:, None]
    ref_mel2 = jnp.arange(TM2)[None, :] >= m_lens2[:, None]
    assert src2.shape == (B2, TC2) and mel2.shape == (B2, TM2)
    assert bool(jnp.array_equal(src2, ref_src2))
    assert bool(jnp.array_equal(mel2, ref_mel2))

    # Third check: long sequences, multi-step grid with boundary (partial) blocks.
    B3, TC3, TM3 = 2, 300, 2500
    c_lens3 = jnp.array([300, 131], dtype=jnp.int32)
    m_lens3 = jnp.array([2500, 1777], dtype=jnp.int32)
    src3, mel3 = get_masks(c_lens3, TC3, m_lens3, TM3)
    jax.block_until_ready(src3)
    jax.block_until_ready(mel3)
    ref_src3 = jnp.arange(TC3)[None, :] >= c_lens3[:, None]
    ref_mel3 = jnp.arange(TM3)[None, :] >= m_lens3[:, None]
    assert src3.shape == (B3, TC3) and mel3.shape == (B3, TM3)
    assert bool(jnp.array_equal(src3, ref_src3))
    assert bool(jnp.array_equal(mel3, ref_mel3))

    print("KERNEL_OK")
</pallas_src>

<mosaic_0001>
module attributes {stable_mosaic.version = 11 : i64} {
  func.func @_masks_kernel(%arg0: i32, %arg1: memref<2x2xi32, #tpu.memory_space<vmem>>, %arg2: memref<2x8xi32, #tpu.memory_space<vmem>>, %arg3: memref<2x16xi32, #tpu.memory_space<vmem>>) attributes {dimension_semantics = [#tpu.dimension_semantics<parallel>], iteration_bounds = array<i64: 1>, scalar_prefetch = 0 : i64, scratch_operands = 0 : i64, tpu.core_type = #tpu.core_type<tc>, window_params = [{pipeline_mode = #tpu.pipeline_mode<synchronous>, transform_indices = @transform_0, window_bounds = array<i64: 2, 2>}, {transform_indices = @transform_1, window_bounds = array<i64: 2, 8>}, {transform_indices = @transform_2, window_bounds = array<i64: 2, 16>}]} {
    %c0 = arith.constant 0 : index
    %c0_0 = arith.constant 0 : index
    %0 = vector.load %arg1[%c0, %c0_0] : memref<2x2xi32, #tpu.memory_space<vmem>>, vector<2x2xi32>
    %1 = vector.extract_strided_slice %0 {offsets = [0, 0], sizes = [2, 1], strides = [1, 1]} : vector<2x2xi32> to vector<2x1xi32>
    %2 = vector.extract_strided_slice %0 {offsets = [0, 1], sizes = [2, 1], strides = [1, 1]} : vector<2x2xi32> to vector<2x1xi32>
    %c8_i32 = arith.constant 8 : i32
    %3 = arith.muli %arg0, %c8_i32 : i32
    %4 = tpu.iota {dimensions = array<i32: 1>} : vector<1x8xi32>
    %5 = vector.broadcast %3 : i32 to vector<1x8xi32>
    %6 = arith.addi %5, %4 : vector<1x8xi32>
    %c16_i32 = arith.constant 16 : i32
    %7 = arith.muli %arg0, %c16_i32 : i32
    %8 = tpu.iota {dimensions = array<i32: 1>} : vector<1x16xi32>
    %9 = vector.broadcast %7 : i32 to vector<1x16xi32>
    %10 = arith.addi %9, %8 : vector<1x16xi32>
    %11 = vector.broadcast %6 : vector<1x8xi32> to vector<2x8xi32>
    %12 = vector.broadcast %1 : vector<2x1xi32> to vector<2x8xi32>
    %13 = arith.cmpi sge, %11, %12 : vector<2x8xi32>
    %c0_1 = arith.constant 0 : index
    %c0_2 = arith.constant 0 : index
    %14 = vector.load %arg2[%c0_1, %c0_2] : memref<2x8xi32, #tpu.memory_space<vmem>>, vector<2x8xi32>
    %15 = arith.extui %13 : vector<2x8xi1> to vector<2x8xi32>
    %cst = arith.constant dense<0> : vector<2x8xi32>
    %16 = arith.cmpi ne, %14, %cst : vector<2x8xi32>
    tpu.vector_store %arg2[%c0_1, %c0_2], %15 {strides = array<i32>} : memref<2x8xi32, #tpu.memory_space<vmem>>, vector<2x8xi32>,
    %17 = vector.broadcast %10 : vector<1x16xi32> to vector<2x16xi32>
    %18 = vector.broadcast %2 : vector<2x1xi32> to vector<2x16xi32>
    %19 = arith.cmpi sge, %17, %18 : vector<2x16xi32>
    %c0_3 = arith.constant 0 : index
    %c0_4 = arith.constant 0 : index
    %20 = vector.load %arg3[%c0_3, %c0_4] : memref<2x16xi32, #tpu.memory_space<vmem>>, vector<2x16xi32>
    %21 = arith.extui %19 : vector<2x16xi1> to vector<2x16xi32>
    %cst_5 = arith.constant dense<0> : vector<2x16xi32>
    %22 = arith.cmpi ne, %20, %cst_5 : vector<2x16xi32>
    tpu.vector_store %arg3[%c0_3, %c0_4], %21 {strides = array<i32>} : memref<2x16xi32, #tpu.memory_space<vmem>>, vector<2x16xi32>,
    return
  }
  func.func @transform_0(%arg0: i32) -> (i32, i32) {
    %c0_i32 = arith.constant 0 : i32
    %c0_i32_0 = arith.constant 0 : i32
    %c0_i32_1 = arith.constant 0 : i32
    return %c0_i32, %c0_i32_0 : i32, i32
  }
  func.func @transform_1(%arg0: i32) -> (i32, i32) {
    %c0_i32 = arith.constant 0 : i32
    %c0_i32_0 = arith.constant 0 : i32
    return %c0_i32, %arg0 : i32, i32
  }
  func.func @transform_2(%arg0: i32) -> (i32, i32) {
    %c0_i32 = arith.constant 0 : i32
    %c0_i32_0 = arith.constant 0 : i32
    return %c0_i32, %arg0 : i32, i32
  }
}

</mosaic_0001>

<bundles_post_ra>
// kernel: tpu_custom_call.1
= control target key start
LH: loop header
LB: loop body
LE: loop exit
PB: predicated region body
PF: predicated region fallthrough
CT: control target
= control target key end

     0   :  { %8 = vsyncpa [#allocation3], 0  ;;  %s81_s9 = smov [#allocation2]   ;;  %s108_s0 = inlined_call_operand.hbm [shape: s32[2,2], index: 0, kind: input, shape index: {}]   ;;  %s109_s1 = inlined_call_operand.vmem [shape: s32[2,8], index: 1, kind: output, shape index: {0}]   ;;  %s110_s2 = inlined_call_operand.vmem [shape: s32[2,16], index: 2, kind: output, shape index: {1}]  }
   0x1   :  { %s15_s10 = sshll.u32 %s81_s9, 4  ;;  %s16_s10 = int_to_ptr.vmem [resolvable:$true] %s15_s10 }
   0x2   :  { %s67_s11 = scalar_lea.vmem %s16_s10, 32  ;;  %p72_p1 = scmp.lt.s32.totalorder %s16_s10, %s16_s10 }
   0x3   :  { %p68_p0 = scmp.ne.s32.totalorder %s16_s10, %s67_s11  ;;  %p73_p2 = scmp.lt.s32.totalorder %s67_s11, %s67_s11 }
   0x5   :  { %p74_p3 = por %p73_p2, %p72_p1 }
   0x7   :  { %p75_p4 = pnand %p74_p3, %p68_p0 }
   0x9   :  { %78 = shalt.err (!%p75_p4)
}
   0xa   :  { %18 = dma.hbm_to_vmem [thread:$0]  %s108_s0, 32, %s16_s10, [#allocation3]  }
   0xb   :  { %79 = dma.done.wait [#allocation3], 32  }
   0xc   :  { %80 = vsyncadd [#allocation3], 4294967264  ;;  %v82_v0 = vmov 0   ;;  %v22_v1 = vld [vmem:[#allocation2] sm:$0x3]  ;;  %v83_v2 = vmov 1   ;;  %v24_v3 = vlaneseq }
   0xd   :  { %57 = vset.pattern.permute.xlu0 %v82_v0  ;;  %vm36_vm0 = vcmask 58368   ;;  %vm43_vm2 = vcmask 123904  }
   0xe   :  { %32 = vperm.xlu0 %57, %v22_v1   ;;  %v25_v4 = vand.u32 127, %v24_v3 }
  0x12   :  { %58 = vset.pattern.permute.xlu0 %v83_v2 }
  0x13   :  { %39 = vperm.xlu0 %58, %v22_v1  }
  0x89   :  { %v33_v5 = vpop.permute.xlu0 %32 }
  0x8a   :  { %vm34_vm1 = vcmp.ge.s32.totalorder %v25_v4, %v33_v5 }
  0x8b   :  { %v35_v6 = vsel %vm34_vm1, 1, %v82_v0 }
  0x8c   :  { %37 = vst.msk [vmem:[%s109_s1] sm:$0x3] %vm36_vm0, %v35_v6 }
  0x8e   :  { %v40_v7 = vpop.permute.xlu0 %39 }
  0x8f   :  { %vm41_vm3 = vcmp.ge.s32.totalorder %v25_v4, %v40_v7 }
  0x90   :  { %v42_v8 = vsel %vm41_vm3, 1, %v82_v0 }
  0x91   :  { %44 = vst.msk [vmem:[%s110_s2] sm:$0x3] %vm43_vm2, %v42_v8 }
  0x92   :  { %53 = vsyncpa [#allocation3], 1 }

</bundles_post_ra>
